<compile_context>
chip_gen: v6e
topology: v6e:2x2x1
jax: 0.10.0
libtpu: 0.0.40
codegen_flags: <defaults>
</compile_context>

<pallas_src>
import jax
import jax.numpy as jnp
from jax.experimental import pallas as pl
from jax.experimental.pallas import tpu as pltpu

EPS = 1e-8  # matches register_buffer('eps', 1e-08)


def _modconv_kernel(s_ref, d_ref, w_ref, xcol_ref, o_ref, wm_ref):
    # s_ref    : (1, 1, CKK)   f32  per-batch modulation (repeated over K*K taps)
    # d_ref    : (1, Cout, 1)  f32  per-batch demodulation scale (ones if off)
    # w_ref    : (Cout, CKK)   bf16 shared flattened weight (single-buffered)
    # xcol_ref : (1, CKK, T)   bf16 im2col tile for this (batch, hw-tile)
    # o_ref    : (1, Cout, T)  output tile
    # wm_ref   : (Cout, CKK)   bf16 VMEM scratch: modulated weight for this batch

    # Hoist modulate + demodulate out of the spatial-tile loop: recompute only on
    # the first HW tile of each batch element; the scratch persists across tiles.
    @pl.when(pl.program_id(1) == 0)
    def _():
        w = w_ref[...].astype(jnp.float32)           # (Cout, CKK), math in f32
        wm = w * s_ref[0] * d_ref[0]                 # (1,CKK) and (Cout,1) bcast
        wm_ref[...] = wm.astype(jnp.bfloat16)

    # Pure MXU inner loop: bf16 x bf16 -> f32 accumulate.
    out = jnp.dot(wm_ref[...], xcol_ref[0], preferred_element_type=jnp.float32)
    o_ref[0] = out.astype(o_ref.dtype)


def modulated_conv2d(x, style, weight, affine_w, affine_b, *,
                     demodulate=True, hw_tile=512):
    """x: (B, Cin, H, W), style: (B, style_dim), weight: (Cout, Cin, K, K)."""
    B, Cin, H, W = x.shape
    Cout, _, K, _ = weight.shape
    pad = K // 2
    HW = H * W
    CKK = Cin * K * K

    # affine = LinearLayer(style_dim, in_channels, bias_init=1.0)
    s = (style @ affine_w.T + affine_b).astype(jnp.float32)          # (B, Cin)

    # Exact f32 demod scale, computed algebraically (cheap, no big intermediate):
    #   sum_{i,kh,kw} (w[o,i,kh,kw] * s[b,i])^2 = sum_i s[b,i]^2 * sum_{kh,kw} w^2
    if demodulate:
        wsq = jnp.sum(weight.astype(jnp.float32) ** 2, axis=(2, 3))  # (Cout, Cin)
        d = jax.lax.rsqrt((s ** 2) @ wsq.T + EPS)                    # (B, Cout)
    else:
        d = jnp.ones((B, Cout), jnp.float32)

    s_rep = jnp.repeat(s, K * K, axis=1).reshape(B, 1, CKK)          # j = i*K*K + r
    d_col = d.reshape(B, Cout, 1)

    w_flat = weight.reshape(Cout, CKK).astype(jnp.bfloat16)          # j = i*K*K + kh*K + kw

    # im2col (glue), emitted directly in bf16:
    #   x_col[b, i*K*K + kh*K + kw, h*W + w] = x_pad[b, i, h+kh, w+kw]
    xb = x.astype(jnp.bfloat16)
    xp = jnp.pad(xb, ((0, 0), (0, 0), (pad, pad), (pad, pad)))
    cols = [xp[:, :, kh:kh + H, kw:kw + W].reshape(B, Cin, 1, HW)
            for kh in range(K) for kw in range(K)]
    x_col = jnp.concatenate(cols, axis=2).reshape(B, CKK, HW)

    # Spatial tiling: a 128/256-aligned tile (default 512) when HW is large,
    # otherwise the whole (full-dim) spatial extent in one block.
    if HW % 128 == 0 and HW > hw_tile:
        T = hw_tile                     # multiple of 128 and 256 (MXU-friendly)
    else:
        T = HW                          # full-dim block is always legal
    n_hw = pl.cdiv(HW, T)

    # Explicit VMEM budget sized to the chosen tiles (double-buffer headroom),
    # capped at 64 MiB so it stays valid on v7x's smaller physical VMEM.
    out_isz = jnp.dtype(x.dtype).itemsize
    vmem_need = (
        Cout * CKK * 2                 # weight (bf16, single-buffered)
        + Cout * CKK * 2               # wm scratch (bf16)
        + 2 * CKK * T * 2              # x_col tile (bf16, double-buffered)
        + 2 * Cout * T * out_isz       # output tile (double-buffered)
        + 2 * (CKK + Cout) * 4         # s_rep + d tiles (tiny)
    )
    vmem_limit = int(max(32 << 20, min(2 * vmem_need + (4 << 20), 64 << 20)))

    out = pl.pallas_call(
        _modconv_kernel,
        out_shape=jax.ShapeDtypeStruct((B, Cout, HW), x.dtype),
        grid_spec=pltpu.PrefetchScalarGridSpec(
            num_scalar_prefetch=0,
            grid=(B, n_hw),
            in_specs=[
                pl.BlockSpec((1, 1, CKK), lambda b, t: (b, 0, 0)),    # s_rep
                pl.BlockSpec((1, Cout, 1), lambda b, t: (b, 0, 0)),   # demod scale
                pl.BlockSpec((Cout, CKK), lambda b, t: (0, 0),
                             pipeline_mode=pl.Buffered(1)),           # weight (constant)
                pl.BlockSpec((1, CKK, T), lambda b, t: (b, 0, t)),    # x_col tile
            ],
            out_specs=pl.BlockSpec((1, Cout, T), lambda b, t: (b, 0, t)),
            scratch_shapes=[pltpu.VMEM((Cout, CKK), jnp.bfloat16)],   # wm scratch
        ),
        compiler_params=pltpu.CompilerParams(
            # B is independent (megacore-shardable); the HW-tile axis carries the
            # per-batch wm scratch (written at tile 0, read by later tiles).
            dimension_semantics=("parallel", "arbitrary"),
            vmem_limit_bytes=vmem_limit,
        ),
    )(s_rep, d_col, w_flat, x_col)

    return out.reshape(B, Cout, H, W)


def _reference(x, style, weight, affine_w, affine_b, demodulate=True):
    """Pure-JAX f32 reference matching the PyTorch forward (upsample=False)."""
    B, Cin, H, W = x.shape
    Cout, _, K, _ = weight.shape
    pad = K // 2
    s = style @ affine_w.T + affine_b                       # (B, Cin)
    w = weight[None] * s[:, None, :, None, None]            # (B, Cout, Cin, K, K)
    if demodulate:
        d = jax.lax.rsqrt(jnp.sum(w * w, axis=(2, 3, 4)) + EPS)
        w = w * d[:, :, None, None, None]
    xp = jnp.pad(x, ((0, 0), (0, 0), (pad, pad), (pad, pad)))
    out = jnp.zeros((B, Cout, H, W), jnp.float32)
    for kh in range(K):
        for kw in range(K):
            patch = xp[:, :, kh:kh + H, kw:kw + W]          # (B, Cin, H, W)
            out = out + jnp.einsum('boi,bihw->bohw', w[:, :, :, kh, kw], patch)
    return out


if __name__ == "__main__":
    B, Cin, Cout, K, style_dim, H, W = 2, 4, 8, 3, 8, 16, 16

    key = jax.random.PRNGKey(0)
    k_w, k_aw, k_x, k_s = jax.random.split(key, 4)

    # weight: kaiming_normal_(a=0.2), fan_in = Cin*K*K, gain = sqrt(2/(1+a^2))
    fan_in = Cin * K * K
    gain = (2.0 / (1.0 + 0.2 ** 2)) ** 0.5
    weight = jax.random.normal(k_w, (Cout, Cin, K, K), jnp.float32) * (gain / fan_in ** 0.5)

    # affine = LinearLayer(style_dim, Cin, bias_init=1.0)
    affine_w = jax.random.normal(k_aw, (Cin, style_dim), jnp.float32) / style_dim ** 0.5
    affine_b = jnp.ones((Cin,), jnp.float32)

    x = jax.random.normal(k_x, (B, Cin, H, W), jnp.float32)
    style = jax.random.normal(k_s, (B, style_dim), jnp.float32)

    out = modulated_conv2d(x, style, weight, affine_w, affine_b, demodulate=True)
    out = jax.block_until_ready(out)

    ref = _reference(x, style, weight, affine_w, affine_b, demodulate=True)
    assert out.shape == (B, Cout, H, W)
    # bf16 MXU operands with f32 accumulation -> relaxed tolerance vs f32 reference.
    assert jnp.allclose(out, ref, atol=5e-2, rtol=5e-2), "mismatch vs reference"

    print("KERNEL_OK")
</pallas_src>

<mosaic_0001>
module attributes {stable_mosaic.version = 11 : i64} {
  func.func @_modconv_kernel(%arg0: i32, %arg1: i32, %arg2: memref<1x1x36xf32, #tpu.memory_space<vmem>>, %arg3: memref<1x8x1xf32, #tpu.memory_space<vmem>>, %arg4: memref<8x36xbf16, #tpu.memory_space<vmem>>, %arg5: memref<1x36x256xbf16, #tpu.memory_space<vmem>>, %arg6: memref<1x8x256xf32, #tpu.memory_space<vmem>>, %arg7: memref<8x36xbf16, #tpu.memory_space<vmem>>) attributes {dimension_semantics = [#tpu.dimension_semantics<parallel>, #tpu.dimension_semantics<arbitrary>], iteration_bounds = array<i64: 2, 1>, scalar_prefetch = 0 : i64, scratch_operands = 1 : i64, tpu.core_type = #tpu.core_type<tc>, window_params = [{transform_indices = @transform_0, window_bounds = array<i64: 1, 1, 36>}, {transform_indices = @transform_1, window_bounds = array<i64: 1, 8, 1>}, {pipeline_mode = #tpu.pipeline_mode<synchronous>, transform_indices = @transform_2, window_bounds = array<i64: 8, 36>}, {transform_indices = @transform_3, window_bounds = array<i64: 1, 36, 256>}, {transform_indices = @transform_4, window_bounds = array<i64: 1, 8, 256>}]} {
    %c0_i32 = arith.constant 0 : i32
    %0 = arith.cmpi eq, %arg1, %c0_i32 : i32
    %1 = arith.extui %0 : i1 to i32
    %c0_i32_0 = arith.constant 0 : i32
    %2 = arith.cmpi ne, %1, %c0_i32_0 : i32
    scf.if %2 {
      %c0_8 = arith.constant 0 : index
      %c0_9 = arith.constant 0 : index
      %10 = vector.load %arg4[%c0_8, %c0_9] : memref<8x36xbf16, #tpu.memory_space<vmem>>, vector<8x36xbf16>
      %11 = arith.extf %10 : vector<8x36xbf16> to vector<8x36xf32>
      %c0_10 = arith.constant 0 : index
      %c0_11 = arith.constant 0 : index
      %c0_12 = arith.constant 0 : index
      %12 = vector.load %arg2[%c0_10, %c0_11, %c0_12] : memref<1x1x36xf32, #tpu.memory_space<vmem>>, vector<1x1x36xf32>
      %13 = vector.shape_cast %12 : vector<1x1x36xf32> to vector<1x36xf32>
      %14 = vector.broadcast %13 : vector<1x36xf32> to vector<8x36xf32>
      %15 = arith.mulf %11, %14 : vector<8x36xf32>
      %c0_13 = arith.constant 0 : index
      %c0_14 = arith.constant 0 : index
      %c0_15 = arith.constant 0 : index
      %16 = vector.load %arg3[%c0_13, %c0_14, %c0_15] : memref<1x8x1xf32, #tpu.memory_space<vmem>>, vector<1x8x1xf32>
      %17 = vector.shape_cast %16 : vector<1x8x1xf32> to vector<8x1xf32>
      %18 = vector.broadcast %17 : vector<8x1xf32> to vector<8x36xf32>
      %19 = arith.mulf %15, %18 : vector<8x36xf32>
      %20 = arith.truncf %19 : vector<8x36xf32> to vector<8x36xbf16>
      %c0_16 = arith.constant 0 : index
      %c0_17 = arith.constant 0 : index
      %21 = vector.load %arg7[%c0_16, %c0_17] : memref<8x36xbf16, #tpu.memory_space<vmem>>, vector<8x36xbf16>
      tpu.vector_store %arg7[%c0_16, %c0_17], %20 {strides = array<i32>} : memref<8x36xbf16, #tpu.memory_space<vmem>>, vector<8x36xbf16>,
    } else {
    }
    %c0 = arith.constant 0 : index
    %c0_1 = arith.constant 0 : index
    %3 = vector.load %arg7[%c0, %c0_1] : memref<8x36xbf16, #tpu.memory_space<vmem>>, vector<8x36xbf16>
    %c0_2 = arith.constant 0 : index
    %c0_3 = arith.constant 0 : index
    %c0_4 = arith.constant 0 : index
    %4 = vector.load %arg5[%c0_2, %c0_3, %c0_4] : memref<1x36x256xbf16, #tpu.memory_space<vmem>>, vector<1x36x256xbf16>
    %5 = vector.shape_cast %4 : vector<1x36x256xbf16> to vector<36x256xbf16>
    %cst = arith.constant dense<0.000000e+00> : vector<8x256xf32>
    %6 = tpu.matmul %3, %5, %cst {dimension_numbers = #tpu.dot_dimension_numbers<[1], [0], [0], [1], [0, 0, 1, 1], [], []>} : vector<8x36xbf16>, vector<36x256xbf16>, vector<8x256xf32> -> vector<8x256xf32>
    %c0_5 = arith.constant 0 : index
    %c0_6 = arith.constant 0 : index
    %c0_7 = arith.constant 0 : index
    %7 = vector.load %arg6[%c0_5, %c0_6, %c0_7] : memref<1x8x256xf32, #tpu.memory_space<vmem>>, vector<1x8x256xf32>
    %8 = vector.shape_cast %7 : vector<1x8x256xf32> to vector<8x256xf32>
    %9 = vector.shape_cast %6 : vector<8x256xf32> to vector<1x8x256xf32>
    tpu.vector_store %arg6[%c0_5, %c0_6, %c0_7], %9 {strides = array<i32>} : memref<1x8x256xf32, #tpu.memory_space<vmem>>, vector<1x8x256xf32>,
    return
  }
  func.func @transform_0(%arg0: i32, %arg1: i32) -> (i32, i32, i32) {
    %c0_i32 = arith.constant 0 : i32
    %c0_i32_0 = arith.constant 0 : i32
    %c0_i32_1 = arith.constant 0 : i32
    return %arg0, %c0_i32, %c0_i32_0 : i32, i32, i32
  }
  func.func @transform_1(%arg0: i32, %arg1: i32) -> (i32, i32, i32) {
    %c0_i32 = arith.constant 0 : i32
    %c0_i32_0 = arith.constant 0 : i32
    %c0_i32_1 = arith.constant 0 : i32
    return %arg0, %c0_i32, %c0_i32_0 : i32, i32, i32
  }
  func.func @transform_2(%arg0: i32, %arg1: i32) -> (i32, i32) {
    %c0_i32 = arith.constant 0 : i32
    %c0_i32_0 = arith.constant 0 : i32
    %c0_i32_1 = arith.constant 0 : i32
    return %c0_i32, %c0_i32_0 : i32, i32
  }
  func.func @transform_3(%arg0: i32, %arg1: i32) -> (i32, i32, i32) {
    %c0_i32 = arith.constant 0 : i32
    %c0_i32_0 = arith.constant 0 : i32
    return %arg0, %c0_i32, %arg1 : i32, i32, i32
  }
  func.func @transform_4(%arg0: i32, %arg1: i32) -> (i32, i32, i32) {
    %c0_i32 = arith.constant 0 : i32
    %c0_i32_0 = arith.constant 0 : i32
    return %arg0, %c0_i32, %arg1 : i32, i32, i32
  }
}

</mosaic_0001>

<bundles_post_ra>
// kernel: tpu_custom_call.1
= control target key start
LH: loop header
LB: loop body
LE: loop exit
PB: predicated region body
PF: predicated region fallthrough
CT: control target
= control target key end

     0   :  { %9 = vsyncpa [#allocation4], 0  ;;  %s796_s0 = inlined_call_operand.vmem [shape: f32[2,1,36], index: 0, kind: input, shape index: {}]   ;;  %s797_s1 = inlined_call_operand.vmem [shape: f32[2,8,1], index: 1, kind: input, shape index: {}]   ;;  %s798_s2 = inlined_call_operand.vmem [shape: bf16[8,36], index: 2, kind: input, shape index: {}]   ;;  %s799_s3 = inlined_call_operand.vmem [shape: bf16[2,36,256], index: 3, kind: input, shape index: {}]   ;;  %s800_s4 = inlined_call_operand.hbm [shape: f32[2,8,256], index: 4, kind: output, shape index: {}]  }
   0x1   :  { %11 = vsyncpa [#allocation4 + $0x1], 0  ;;  %s676_s15 = smov 0   ;;  %s678_s16 = smov 0  }
   0x2   :  { %s680_s17 = smov 0   ;;  %s682_s18 = smov 0  }
   0x3   :  { %s684_s19 = smov 0   ;;  %s686_s20 = smov 0  }
   0x4 LB: > { %s482_s21 = sadd.s32 4294967295, %s647_s20   ;;  %s483_s22 = sadd.s32 4294967294, %s647_s20   ;;  %s647_s20 = sphi %s686_s20, %s17_s20   ;;  %s643_s19 = sphi %s684_s19, %s807_s19   ;;  %s639_s18 = sphi %s682_s18, %s806_s18   ;;  %s635_s17 = sphi %s680_s17, %s805_s17   ;;  %s631_s16 = sphi %s678_s16, %s804_s16   ;;  %s627_s15 = sphi %s676_s15, %s803_s15  }
   0x5   : > { %s29_s23 = sadd.s32 1, %s643_s19  ;;  %s139_s24 = sadd.s32 1, %s635_s17 }
   0x6   : > { %p31_p0 = scmp.ge.s32.totalorder %s29_s23, 2  ;;  %p149_p1 = scmp.ne.s32.totalorder %s635_s17, %s631_s16 }
   0x7   : > { %p150_p2 = scmp.eq.s32.totalorder %s482_s21, 1  ;;  %p155_p3 = scmp.ne.s32.totalorder %s631_s16, %s627_s15 }
   0x8   : > { %s809_s23 = smov (%p31_p0, %s29_s23), 0  ;;  %p156_p5 = scmp.eq.s32.totalorder %s483_s22, 1 }
   0x9   : > { %p716_p4 = por %p150_p2, %p149_p1  ;;  %s134_s26 = ssub.s32 %s643_s19, %s809_s23 }
   0xa   : > { %p486_p6 = scmp.ge.s32.totalorder %s647_s20, 1  ;;  %p137_p7 = scmp.eq.s32.totalorder %s134_s26, 0 }
   0xb   : > { %p723_p8 = por %p156_p5, %p155_p3  ;;  %p203_p9 = scmp.lt.s32.totalorder %s647_s20, 3 }
   0xc   : > { %s729_s28 = scalar_select %p137_p7, %s635_s17, %s139_s24  }
   0xd   : > { %p204_p10 = pnand %p486_p6, %p203_p9 }
   0xe   : > { %p240_p11 = scmp.lt.s32.totalorder (!%p204_p10), %s639_s18, 1  ;;  %s237_s24 = sand.u32 (!%p204_p10), 1, %s631_s16  }
   0xf   : > { %207 = sbr.rel (%p204_p10) target bundleno = 370 (0x172), region = 36  ;;  %s487_s26 = sshll.u32 (!%p204_p10), %s237_s24, 4 }
  0x10   : > { %s504_s6 = sshll.u32 (!%p204_p10), %s639_s18, 8  ;;  %s369_s9 = scalar_lea.sflag (!%p204_p10), [#allocation4], %s237_s24 }
  0x14   : > { %v649_v0 = vmov 0   ;;  %s241_s29 = scalar_select %p240_p11, %s639_s18, 1  ;;  %vm318_vm0 = vcmask 1041408   ;;  %v263_v10 = vld [vmem:[%s798_s2] sm:$0xf]  ;;  %vm281_vm1 = vcmask 289792  }
  0x15   : > { %562 = vset.pattern.permute.xlu0 %v649_v0  ;;  %357 = vmatprep.mubr.bf16.mxu0 %v649_v0  ;;  %v264_v11 = vunpack.c.l.bf16 %v263_v10  ;;  %vm314_vm2 = vcmask 293888   ;;  %s650_s18 = smov [#allocation3]  }
  0x16   : > { %s488_s30 = sshll.u32 %s241_s29, 3  ;;  %s505_s8 = smul.u32 40, %s241_s29 }
  0x17   : > { %s246_s7 = scalar_lea.vmem %s797_s1, %s488_s30  ;;  %s242_s22 = scalar_lea.vmem %s796_s0, %s241_s29 }
  0x18   : > { %v273_v1 = vld [vmem:[%s246_s7] sm:$0xff]  ;;  %s255_s11 = scalar_lea.vmem %s799_s3, %s505_s8  ;;  %s239_s30 = scalar_lea.vmem [#allocation3], %s487_s26 }
  0x19   : > { %276 = vperm.xlu0 %562, %v273_v1   ;;  %v288_v2 = vld [vmem:[%s255_s11 + $0x20] sm:$0x33]  ;;  %v565_v5 = vld [vmem:[%s255_s11 + $0x14] ss:$8 sps:$4 sm:$0xff]   ;;  %v567_v7 = vld [vmem:[%s255_s11 + $0x10] ss:$8 sps:$4 sm:$0xff]   ;;  %s752_s8 = scalar_lea.hbm %s800_s4, %s504_s6 }
  0x1a   : > { %v496_v3 = vcombine.high %v288_v2, %v288_v2  ;;  %v495_v4 = vcombine.low %v288_v2, %v288_v2  ;;  %v568_v8 = vld [vmem:[%s255_s11 + $0x4] ss:$8 sps:$4 sm:$0xff]   ;;  %v570_v9 = vld [vmem:[%s255_s11] ss:$8 sps:$4 sm:$0xff]   ;;  %s385_s5 = sshll.u32 %s239_s30, 4  ;;  %s575_s11 = sshll.u32 %s650_s18, 4  ;;  %s747_s5 = int_to_ptr.vmem [resolvable:$true] %s385_s5  ;;  %s576_s11 = int_to_ptr.vmem [resolvable:$false] %s575_s11 }
  0x1b   : > { %v490_v12 = vld [vmem:[%s242_s22] ss:$0 sm:$0xff]  ;;  %s571_s10 = scalar_lea.vmem %s747_s5, 256  ;;  %s577_s12 = scalar_lea.vmem %s576_s11, 512 }
  0x1c   : > { %497 = vmatprep.subr.msk.bf16.mxu0 %vm318_vm0, %v496_v3  ;;  %v320_v6 = vsel %vm318_vm0, %v495_v4, 0  ;;  %v272_v13 = vmul.f32 %v490_v12, %v264_v11  ;;  %p572_p12 = scmp.ne.s32.totalorder %s747_s5, %s571_s10  ;;  %p578_p1 = scmp.lt.s32.totalorder %s747_s5, %s576_s11 }
  0x1d   : > { %336 = vmatpush1.bf16.msra.mxu0 %v320_v6  ;;  %p579_p2 = scmp.lt.s32.totalorder %s577_s12, %s571_s10 }
  0x1e   : > { %337 = vmatprep.subr.bf16.mxu0 %v565_v5  ;;  %p573_p13 = pnand %p572_p12, %p716_p4 }
  0x1f   : > { %p580_p3 = por %p579_p2, %p578_p1 }
  0x20   : > { %p574_p0 = pneg %p573_p13 }
  0x21   : > { %338 = vmatpush1.bf16.msra.mxu0 %v567_v7 }
  0x22   : > { %339 = vmatprep.subr.bf16.mxu0 %v568_v8  ;;  %p581_p5 = pnand %p580_p3, %p574_p0 }
  0x25   : > { %340 = vmatpush1.bf16.msra.mxu0 %v570_v9 }
  0x94   : > { %v277_v14 = vpop.permute.xlu0 %276 }
  0x95   : > { %v279_v15 = vmul.f32 %v277_v14, %v272_v13 }
  0x97   : > { %v280_v16 = vpack.c.bf16 %v279_v15, %v279_v15 }
  0x99   : > { %282 = vst.msk [vmem:[#allocation2] sm:$0xf] %vm281_vm1, %v280_v16 }
  0xa0   : > { %v283_v17 = vld [vmem:[#allocation2] sm:$0xf] }
  0xa1   : > { %498 = vmatmul.mubr.msk.bf16.vlgmr.msra.gmra.mxu0 %vm314_vm2, %v283_v17 }
 0x161   : > { %v359_v18 = vpop.f32.mrf.mxu0 }
 0x162   : > { %366 = vst [vmem:[%s239_s30] sm:$0xff] %v359_v18 }
 0x163   : > { %v361_v19 = vpop.f32.mrf.mxu0 }
 0x164   : > { %367 = vst [vmem:[%s239_s30 + $0x8] sm:$0xff] %v361_v19 }
 0x165   : > { %v363_v20 = vpop.f32.mrf.mxu0 }
 0x166   : > { %584 = shalt.err (!%p581_p5)
}
 0x167   : > { %s585_s13 = scalar_lea.hbm %s752_s8, 256  ;;  %s589_s22 = scalar_lea.hbm %s800_s4, 512 }
 0x168   : > { %p586_p6 = scmp.ne.s32.totalorder %s752_s8, %s585_s13  ;;  %p590_p10 = scmp.lt.s32.totalorder %s752_s8, %s800_s4 }
 0x169   : > { %p591_p11 = scmp.lt.s32.totalorder %s589_s22, %s585_s13 }
 0x16a   : > { %p587_p7 = pnand %p586_p6, %p716_p4 }
 0x16b   : > { %p592_p12 = por %p591_p11, %p590_p10 }
 0x16c   : > { %p588_p9 = pneg %p587_p7 }
 0x16e   : > { %p593_p13 = pnand %p592_p12, %p588_p9 }
 0x170   : > { %596 = shalt.err (!%p593_p13)
}
 0x171   : > { %506 = dma.vmem_to_hbm [thread:$0]  (%p716_p4), %s747_s5, 256, %s752_s8, %s369_s9   ;;  %v364_v21 = vpop.f32.mrf.mxu0 }
 0x172 PF: > { %p512_p0 = scmp.ge.s32.totalorder %s647_s20, 2  ;;  %s397_s30 = sand.u32 1, %s627_s15  }
 0x173   : > { %s398_s6 = scalar_lea.sflag [#allocation4], %s397_s30 }
 0x174   : > { %p509_p1 = pnand %p512_p0, %p723_p8 }
 0x176   : > { %p510_p2 = pneg %p509_p1 }
 0x178   : > { %622 = dma.done.wait (%p510_p2), %s398_s6, 256  }
 0x179   : > { %624 = vsyncadd (%p510_p2), %s398_s6, 4294967040  ;;  %s17_s20 = sadd.s32 1, %s647_s20   ;;  %s803_s15 = smov %s631_s16 }
 0x17a   : > { %p14_p3 = scmp.ge.s32.totalorder %s17_s20, 4   ;;  %s804_s16 = smov %s635_s17 }
 0x17b   : > { %s805_s17 = smov %s729_s28  ;;  %s806_s18 = smov %s643_s19 }
 0x17c   : > { %s807_s19 = smov %s809_s23  ;;  %16 = sbr.rel (!%p14_p3) target bundleno = 4 (0x4), region = 81 }
 0x181   :  { %403 = vsyncpa [#allocation4], 1 }
 0x182   :  { %405 = vsyncpa [#allocation4 + $0x1], 1 }

</bundles_post_ra>
